<compile_context>
chip_gen: v7x
topology: tpu7x:2x2x1
jax: 0.10.0
libtpu: 0.0.40
codegen_flags: <defaults>
</compile_context>

<pallas_src>
import functools

import jax
import jax.numpy as jnp
from jax.experimental import pallas as pl
from jax.experimental.pallas import tpu as pltpu

LANE = 128


def _round_up(v, m):
    return (v + m - 1) // m * m


# --------------------------------------------------------------------------------------
# Kernels
# --------------------------------------------------------------------------------------
def _layer1_kernel(adj_ref, xf_ref, xr_ref, w1l_ref, w1r_ref, b1_ref, w2l_ref,
                   h_ref, hw_ref):
    """SAGEConv1 + ReLU (inference dropout = identity) for one row-block.

    Also pre-multiplies the hidden activations by W2_l so that layer 2's O(N^2)
    aggregation matmul is only C_pad wide (reassociation: adj @ (h @ W2_l))."""
    # mean-neighbor aggregation: bf16 x bf16 on the MXU, f32 accumulate
    agg = jnp.dot(adj_ref[...], xf_ref[...], preferred_element_type=jnp.float32)
    x_rows = xr_ref[...].astype(jnp.float32)
    h = (jnp.dot(agg, w1l_ref[...], preferred_element_type=jnp.float32)
         + jnp.dot(x_rows, w1r_ref[...], preferred_element_type=jnp.float32)
         + b1_ref[...])
    h = jnp.maximum(h, 0.0)                                   # ReLU
    # F.dropout(training=self.training): inference path => identity.
    h_ref[...] = h.astype(jnp.bfloat16)
    hw_ref[...] = jnp.dot(h, w2l_ref[...],
                          preferred_element_type=jnp.float32).astype(jnp.bfloat16)


def _layer2_kernel(adj_ref, hwf_ref, hr_ref, w2r_ref, b2_ref, out_ref, *, num_classes):
    """SAGEConv2 (reassociated aggregation) + log_softmax for one row-block."""
    # adj @ (h @ W2_l): the N^2-sized matmul is only C_pad wide
    agg_c = jnp.dot(adj_ref[...], hwf_ref[...], preferred_element_type=jnp.float32)
    h_rows = hr_ref[...].astype(jnp.float32)
    z = (agg_c
         + jnp.dot(h_rows, w2r_ref[...], preferred_element_type=jnp.float32)
         + b2_ref[...])
    # mask padded class columns so they do not pollute the softmax reduction
    col = jax.lax.broadcasted_iota(jnp.int32, z.shape, 1)
    z = jnp.where(col < num_classes, z, -1e30)
    m = jnp.max(z, axis=-1, keepdims=True)
    zs = z - m
    lse = jnp.log(jnp.sum(jnp.exp(zs), axis=-1, keepdims=True))
    out_ref[...] = zs - lse


# --------------------------------------------------------------------------------------
# Wrapper
# --------------------------------------------------------------------------------------
def prepare_graph(x, edge_index, num_nodes):
    """Per-graph preprocessing (do once for a static graph): padded bf16 row-normalized
    dense adjacency A[dst, src] = 1/deg_in(dst) and padded bf16 features."""
    n = num_nodes
    f = x.shape[1]

    # row-tile size / padded node count (keeps double-buffered bf16 adj tiles modest,
    # well under the v7x 64 MiB VMEM / default scoped limits)
    if n <= 512:
        tm = _round_up(n, 8)
        n_pad = tm
    else:
        tm = 512
        n_pad = _round_up(n, 512)
    f_pad = _round_up(f, LANE)

    src, dst = edge_index[0], edge_index[1]
    a = jnp.zeros((n, n), jnp.float32).at[dst, src].add(1.0)
    deg = jnp.sum(a, axis=1, keepdims=True)
    a = a / jnp.maximum(deg, 1.0)

    adj = jnp.zeros((n_pad, n_pad), jnp.bfloat16).at[:n, :n].set(a.astype(jnp.bfloat16))
    xp = jnp.zeros((n_pad, f_pad), jnp.bfloat16).at[:n, :f].set(x.astype(jnp.bfloat16))
    return {"adj": adj, "x": xp, "tm": tm}


def pad_params(params):
    """Zero-pad every weight/bias lane dimension (and contracting dim) up to 128."""
    def pad2(w):
        r, c = w.shape
        return jnp.zeros((_round_up(r, LANE), _round_up(c, LANE)),
                         jnp.float32).at[:r, :c].set(w)

    def padb(b):
        c = b.shape[-1]
        return jnp.zeros((1, _round_up(c, LANE)), jnp.float32).at[:, :c].set(b.reshape(1, c))

    return {"w1l": pad2(params["w1l"]), "w1r": pad2(params["w1r"]), "b1": padb(params["b1"]),
            "w2l": pad2(params["w2l"]), "w2r": pad2(params["w2r"]), "b2": padb(params["b2"])}


def graphsage_forward(graph, pp, num_classes):
    adj, xp, tm = graph["adj"], graph["x"], graph["tm"]
    n_pad = adj.shape[0]
    f_pad = xp.shape[1]
    h_pad = pp["w1l"].shape[1]
    c_pad = pp["w2l"].shape[1]
    grid = (n_pad // tm,)

    row_block = lambda bs: pl.BlockSpec(bs, lambda i: (i, 0))
    resident = lambda bs: pl.BlockSpec(bs, lambda i: (0, 0))
    cparams = pltpu.CompilerParams(dimension_semantics=("parallel",))

    # ---- layer 1: h = relu(SAGEConv1(x));  also emit h @ W2_l for the reassociated layer 2
    h, hw = pl.pallas_call(
        _layer1_kernel,
        grid=grid,
        in_specs=[
            row_block((tm, n_pad)),        # adjacency row-block (dominant DMA, pipelined)
            resident((n_pad, f_pad)),      # x, all nodes (held across grid steps)
            row_block((tm, f_pad)),        # x row-block (root path)
            resident((f_pad, h_pad)),      # W1_l
            resident((f_pad, h_pad)),      # W1_r
            resident((1, h_pad)),          # b1
            resident((h_pad, c_pad)),      # W2_l
        ],
        out_specs=[row_block((tm, h_pad)), row_block((tm, c_pad))],
        out_shape=[jax.ShapeDtypeStruct((n_pad, h_pad), jnp.bfloat16),
                   jax.ShapeDtypeStruct((n_pad, c_pad), jnp.bfloat16)],
        compiler_params=cparams,
    )(adj, xp, xp, pp["w1l"], pp["w1r"], pp["b1"], pp["w2l"])

    # ---- layer 2: z = adj @ (h @ W2_l) + h @ W2_r + b2 ; log_softmax
    out = pl.pallas_call(
        functools.partial(_layer2_kernel, num_classes=num_classes),
        grid=grid,
        in_specs=[
            row_block((tm, n_pad)),        # adjacency row-block
            resident((n_pad, c_pad)),      # h @ W2_l, all nodes
            row_block((tm, h_pad)),        # h row-block (root path)
            resident((h_pad, c_pad)),      # W2_r
            resident((1, c_pad)),          # b2
        ],
        out_specs=row_block((tm, c_pad)),
        out_shape=jax.ShapeDtypeStruct((n_pad, c_pad), jnp.float32),
        compiler_params=cparams,
    )(adj, hw, h, pp["w2r"], pp["b2"])

    return out


# --------------------------------------------------------------------------------------
# Params / reference
# --------------------------------------------------------------------------------------
def init_params(key, num_features, hid_size, num_classes):
    """torch.nn.Linear-style init (uniform +- 1/sqrt(fan_in))."""
    ks = jax.random.split(key, 6)

    def lin(k, fan_in, fan_out):
        bound = 1.0 / jnp.sqrt(jnp.float32(fan_in))
        return jax.random.uniform(k, (fan_in, fan_out), jnp.float32, -bound, bound)

    b1_bound = 1.0 / jnp.sqrt(jnp.float32(num_features))
    b2_bound = 1.0 / jnp.sqrt(jnp.float32(hid_size))
    return {
        "w1l": lin(ks[0], num_features, hid_size),   # lin_l of conv1 (aggregated path, bias)
        "w1r": lin(ks[1], num_features, hid_size),   # lin_r of conv1 (root path)
        "b1": jax.random.uniform(ks[2], (1, hid_size), jnp.float32, -b1_bound, b1_bound),
        "w2l": lin(ks[3], hid_size, num_classes),
        "w2r": lin(ks[4], hid_size, num_classes),
        "b2": jax.random.uniform(ks[5], (1, num_classes), jnp.float32, -b2_bound, b2_bound),
    }


def graphsage_reference(x, edge_index, params):
    """Pure-JAX f32 reference with identical semantics."""
    n = x.shape[0]
    src, dst = edge_index[0], edge_index[1]
    a = jnp.zeros((n, n), jnp.float32).at[dst, src].add(1.0)
    a = a / jnp.maximum(jnp.sum(a, axis=1, keepdims=True), 1.0)
    h = (a @ x) @ params["w1l"] + x @ params["w1r"] + params["b1"]
    h = jnp.maximum(h, 0.0)
    z = (a @ h) @ params["w2l"] + h @ params["w2r"] + params["b2"]
    return jax.nn.log_softmax(z, axis=-1)


if __name__ == "__main__":
    NUM_NODES = 64
    NUM_FEATURES = 16
    HID_SIZE = 32
    NUM_CLASSES = 8
    NUM_EDGES = 256

    key = jax.random.PRNGKey(0)
    k_x, k_src, k_dst, k_params = jax.random.split(key, 4)

    x = jax.random.normal(k_x, (NUM_NODES, NUM_FEATURES), jnp.float32)
    edge_index = jnp.stack([
        jax.random.randint(k_src, (NUM_EDGES,), 0, NUM_NODES),
        jax.random.randint(k_dst, (NUM_EDGES,), 0, NUM_NODES),
    ], axis=0)  # [2, E] PyG-style edge_index (row 0 = src, row 1 = dst)

    params = init_params(k_params, NUM_FEATURES, HID_SIZE, NUM_CLASSES)

    graph = prepare_graph(x, edge_index, NUM_NODES)      # once per static graph
    pp = pad_params(params)                              # once per parameter set

    out_padded = graphsage_forward(graph, pp, NUM_CLASSES)
    out_padded = jax.block_until_ready(out_padded)
    out = out_padded[:NUM_NODES, :NUM_CLASSES]

    assert out.shape == (NUM_NODES, NUM_CLASSES)
    # rows of log_softmax must exponentiate-sum to ~1
    assert bool(jnp.allclose(jnp.sum(jnp.exp(out), axis=-1), 1.0, atol=1e-4))
    # match the pure-f32 reference (bf16 adjacency/feature rounding allowed for)
    ref = graphsage_reference(x, edge_index, params)
    assert bool(jnp.allclose(out, ref, atol=1e-1)), float(jnp.max(jnp.abs(out - ref)))
    print("KERNEL_OK")
</pallas_src>

<mosaic_0001>
module attributes {stable_mosaic.version = 11 : i64} {
  func.func @_layer1_kernel(%arg0: i32, %arg1: memref<64x64xbf16, #tpu.memory_space<vmem>>, %arg2: memref<64x128xbf16, #tpu.memory_space<vmem>>, %arg3: memref<64x128xbf16, #tpu.memory_space<vmem>>, %arg4: memref<128x128xf32, #tpu.memory_space<vmem>>, %arg5: memref<128x128xf32, #tpu.memory_space<vmem>>, %arg6: memref<1x128xf32, #tpu.memory_space<vmem>>, %arg7: memref<128x128xf32, #tpu.memory_space<vmem>>, %arg8: memref<64x128xbf16, #tpu.memory_space<vmem>>, %arg9: memref<64x128xbf16, #tpu.memory_space<vmem>>) attributes {dimension_semantics = [#tpu.dimension_semantics<parallel>], iteration_bounds = array<i64: 1>, scalar_prefetch = 0 : i64, scratch_operands = 0 : i64, tpu.core_type = #tpu.core_type<tc>, window_params = [{transform_indices = @transform_0, window_bounds = array<i64: 64, 64>}, {pipeline_mode = #tpu.pipeline_mode<synchronous>, transform_indices = @transform_1, window_bounds = array<i64: 64, 128>}, {transform_indices = @transform_2, window_bounds = array<i64: 64, 128>}, {pipeline_mode = #tpu.pipeline_mode<synchronous>, transform_indices = @transform_3, window_bounds = array<i64: 128, 128>}, {pipeline_mode = #tpu.pipeline_mode<synchronous>, transform_indices = @transform_4, window_bounds = array<i64: 128, 128>}, {pipeline_mode = #tpu.pipeline_mode<synchronous>, transform_indices = @transform_5, window_bounds = array<i64: 1, 128>}, {pipeline_mode = #tpu.pipeline_mode<synchronous>, transform_indices = @transform_6, window_bounds = array<i64: 128, 128>}, {transform_indices = @transform_7, window_bounds = array<i64: 64, 128>}, {transform_indices = @transform_8, window_bounds = array<i64: 64, 128>}]} {
    %c0 = arith.constant 0 : index
    %c0_0 = arith.constant 0 : index
    %0 = vector.load %arg1[%c0, %c0_0] : memref<64x64xbf16, #tpu.memory_space<vmem>>, vector<64x64xbf16>
    %c0_1 = arith.constant 0 : index
    %c0_2 = arith.constant 0 : index
    %1 = vector.load %arg2[%c0_1, %c0_2] : memref<64x128xbf16, #tpu.memory_space<vmem>>, vector<64x128xbf16>
    %cst = arith.constant dense<0.000000e+00> : vector<64x128xf32>
    %2 = tpu.matmul %0, %1, %cst {dimension_numbers = #tpu.dot_dimension_numbers<[1], [0], [0], [1], [0, 0, 1, 1], [], []>} : vector<64x64xbf16>, vector<64x128xbf16>, vector<64x128xf32> -> vector<64x128xf32>
    %c0_3 = arith.constant 0 : index
    %c0_4 = arith.constant 0 : index
    %3 = vector.load %arg3[%c0_3, %c0_4] : memref<64x128xbf16, #tpu.memory_space<vmem>>, vector<64x128xbf16>
    %4 = arith.extf %3 : vector<64x128xbf16> to vector<64x128xf32>
    %c0_5 = arith.constant 0 : index
    %c0_6 = arith.constant 0 : index
    %5 = vector.load %arg4[%c0_5, %c0_6] : memref<128x128xf32, #tpu.memory_space<vmem>>, vector<128x128xf32>
    %cst_7 = arith.constant dense<0.000000e+00> : vector<64x128xf32>
    %6 = tpu.matmul %2, %5, %cst_7 {dimension_numbers = #tpu.dot_dimension_numbers<[1], [0], [0], [1], [0, 0, 1, 1], [], []>} : vector<64x128xf32>, vector<128x128xf32>, vector<64x128xf32> -> vector<64x128xf32>
    %c0_8 = arith.constant 0 : index
    %c0_9 = arith.constant 0 : index
    %7 = vector.load %arg5[%c0_8, %c0_9] : memref<128x128xf32, #tpu.memory_space<vmem>>, vector<128x128xf32>
    %cst_10 = arith.constant dense<0.000000e+00> : vector<64x128xf32>
    %8 = tpu.matmul %4, %7, %cst_10 {dimension_numbers = #tpu.dot_dimension_numbers<[1], [0], [0], [1], [0, 0, 1, 1], [], []>} : vector<64x128xf32>, vector<128x128xf32>, vector<64x128xf32> -> vector<64x128xf32>
    %9 = arith.addf %6, %8 : vector<64x128xf32>
    %c0_11 = arith.constant 0 : index
    %c0_12 = arith.constant 0 : index
    %10 = vector.load %arg6[%c0_11, %c0_12] : memref<1x128xf32, #tpu.memory_space<vmem>>, vector<1x128xf32>
    %11 = vector.broadcast %10 : vector<1x128xf32> to vector<64x128xf32>
    %12 = arith.addf %9, %11 : vector<64x128xf32>
    %cst_13 = arith.constant 0.000000e+00 : f32
    %13 = vector.broadcast %cst_13 : f32 to vector<64x128xf32>
    %14 = arith.maximumf %12, %13 : vector<64x128xf32>
    %15 = arith.truncf %14 : vector<64x128xf32> to vector<64x128xbf16>
    %c0_14 = arith.constant 0 : index
    %c0_15 = arith.constant 0 : index
    %16 = vector.load %arg8[%c0_14, %c0_15] : memref<64x128xbf16, #tpu.memory_space<vmem>>, vector<64x128xbf16>
    tpu.vector_store %arg8[%c0_14, %c0_15], %15 {strides = array<i32>} : memref<64x128xbf16, #tpu.memory_space<vmem>>, vector<64x128xbf16>,
    %c0_16 = arith.constant 0 : index
    %c0_17 = arith.constant 0 : index
    %17 = vector.load %arg7[%c0_16, %c0_17] : memref<128x128xf32, #tpu.memory_space<vmem>>, vector<128x128xf32>
    %cst_18 = arith.constant dense<0.000000e+00> : vector<64x128xf32>
    %18 = tpu.matmul %14, %17, %cst_18 {dimension_numbers = #tpu.dot_dimension_numbers<[1], [0], [0], [1], [0, 0, 1, 1], [], []>} : vector<64x128xf32>, vector<128x128xf32>, vector<64x128xf32> -> vector<64x128xf32>
    %19 = arith.truncf %18 : vector<64x128xf32> to vector<64x128xbf16>
    %c0_19 = arith.constant 0 : index
    %c0_20 = arith.constant 0 : index
    %20 = vector.load %arg9[%c0_19, %c0_20] : memref<64x128xbf16, #tpu.memory_space<vmem>>, vector<64x128xbf16>
    tpu.vector_store %arg9[%c0_19, %c0_20], %19 {strides = array<i32>} : memref<64x128xbf16, #tpu.memory_space<vmem>>, vector<64x128xbf16>,
    return
  }
  func.func @transform_0(%arg0: i32) -> (i32, i32) {
    %c0_i32 = arith.constant 0 : i32
    %c0_i32_0 = arith.constant 0 : i32
    return %arg0, %c0_i32 : i32, i32
  }
  func.func @transform_1(%arg0: i32) -> (i32, i32) {
    %c0_i32 = arith.constant 0 : i32
    %c0_i32_0 = arith.constant 0 : i32
    %c0_i32_1 = arith.constant 0 : i32
    return %c0_i32, %c0_i32_0 : i32, i32
  }
  func.func @transform_2(%arg0: i32) -> (i32, i32) {
    %c0_i32 = arith.constant 0 : i32
    %c0_i32_0 = arith.constant 0 : i32
    return %arg0, %c0_i32 : i32, i32
  }
  func.func @transform_3(%arg0: i32) -> (i32, i32) {
    %c0_i32 = arith.constant 0 : i32
    %c0_i32_0 = arith.constant 0 : i32
    %c0_i32_1 = arith.constant 0 : i32
    return %c0_i32, %c0_i32_0 : i32, i32
  }
  func.func @transform_4(%arg0: i32) -> (i32, i32) {
    %c0_i32 = arith.constant 0 : i32
    %c0_i32_0 = arith.constant 0 : i32
    %c0_i32_1 = arith.constant 0 : i32
    return %c0_i32, %c0_i32_0 : i32, i32
  }
  func.func @transform_5(%arg0: i32) -> (i32, i32) {
    %c0_i32 = arith.constant 0 : i32
    %c0_i32_0 = arith.constant 0 : i32
    %c0_i32_1 = arith.constant 0 : i32
    return %c0_i32, %c0_i32_0 : i32, i32
  }
  func.func @transform_6(%arg0: i32) -> (i32, i32) {
    %c0_i32 = arith.constant 0 : i32
    %c0_i32_0 = arith.constant 0 : i32
    %c0_i32_1 = arith.constant 0 : i32
    return %c0_i32, %c0_i32_0 : i32, i32
  }
  func.func @transform_7(%arg0: i32) -> (i32, i32) {
    %c0_i32 = arith.constant 0 : i32
    %c0_i32_0 = arith.constant 0 : i32
    return %arg0, %c0_i32 : i32, i32
  }
  func.func @transform_8(%arg0: i32) -> (i32, i32) {
    %c0_i32 = arith.constant 0 : i32
    %c0_i32_0 = arith.constant 0 : i32
    return %arg0, %c0_i32 : i32, i32
  }
}

</mosaic_0001>

<bundles_post_ra>
// kernel: tpu_custom_call.1
= control target key start
LH: loop header
LB: loop body
LE: loop exit
PB: predicated region body
PF: predicated region fallthrough
CT: control target
= control target key end

     0   :  { %14 = vsyncpa [#allocation3], 0  ;;  %s1624_s0 = inlined_call_operand.hbm [shape: bf16[64,64], index: 0, kind: input, shape index: {}]   ;;  %s1625_s1 = inlined_call_operand.hbm [shape: bf16[64,128], index: 1, kind: input, shape index: {}]   ;;  %s1626_s2 = inlined_call_operand.hbm [shape: bf16[64,128], index: 2, kind: input, shape index: {}]   ;;  %s1627_s3 = inlined_call_operand.hbm [shape: f32[128,128], index: 3, kind: input, shape index: {}]   ;;  %s1628_s4 = inlined_call_operand.hbm [shape: f32[128,128], index: 4, kind: input, shape index: {}]   ;;  %s1629_s5 = inlined_call_operand.vmem [shape: f32[1,128], index: 5, kind: input, shape index: {}]   ;;  %s1630_s6 = inlined_call_operand.hbm [shape: f32[128,128], index: 6, kind: input, shape index: {}]   ;;  %s1631_s7 = inlined_call_operand.hbm [shape: bf16[64,128], index: 7, kind: output, shape index: {0}]   ;;  %s1632_s8 = inlined_call_operand.hbm [shape: bf16[64,128], index: 8, kind: output, shape index: {1}]  }
   0x1   :  { %15 = vsyncpa [#allocation6], 0 }
   0x2   :  { %16 = vsyncpa [#allocation9], 0 }
   0x3   :  { %17 = vsyncpa [#allocation12], 0 }
   0x4   :  { %18 = vsyncpa [#allocation4], 0 }
   0x5   :  { %19 = vsyncpa [#allocation15], 0  ;;  %s1419_s27 = smov [#allocation5]   ;;  %s1420_s29 = smov [#allocation8]  }
   0x6   :  { %s37_s28 = sshll.u32 %s1419_s27, 4  ;;  %s61_s30 = sshll.u32 %s1420_s29, 4  ;;  %s38_s28 = int_to_ptr.vmem [resolvable:$true] %s37_s28  ;;  %s1476_s30 = int_to_ptr.vmem [resolvable:$true] %s61_s30 }
   0x7   :  { %s1231_s11 = scalar_lea.hbm %s1625_s1, 512 }
   0x8   :  { %p1232_p0 = scmp.ne.s32.totalorder %s1625_s1, %s1231_s11  ;;  %p1235_p1 = scmp.lt.u32.totalorder %s1231_s11, %s1625_s1 }
   0xa   :  { %p1237_p2 = pnand %p1235_p1, %p1232_p0 }
   0xc   :  { %1240 = shalt.err (!%p1237_p2)
}
   0xd   :  { %s1241_s16 = scalar_lea.vmem %s38_s28, 512  ;;  %p1246_p4 = scmp.lt.s32.totalorder %s38_s28, %s38_s28 }
   0xe   :  { %p1242_p3 = scmp.ne.s32.totalorder %s38_s28, %s1241_s16  ;;  %p1247_p5 = scmp.lt.s32.totalorder %s1241_s16, %s1241_s16 }
  0x10   :  { %p1248_p6 = por %p1247_p5, %p1246_p4 }
  0x12   :  { %p1249_p7 = pnand %p1248_p6, %p1242_p3 }
  0x14   :  { %1252 = shalt.err (!%p1249_p7)
}
  0x15   :  { %s1421_s17 = smov 64   ;;  %s1422_s18 = smov 4  }
  0x16   :  { %43 = dma.hbm_to_vmem [thread:$0]  %s1625_s1, 512, %s38_s28, [#allocation6], %s1421_s17, %s1421_s17, %s1422_s18  }
  0x17   :  { %s1253_s23 = scalar_lea.hbm %s1627_s3, 2048 }
  0x18   :  { %p1254_p8 = scmp.ne.s32.totalorder %s1627_s3, %s1253_s23  ;;  %p1257_p9 = scmp.lt.u32.totalorder %s1253_s23, %s1627_s3 }
  0x1a   :  { %p1259_p10 = pnand %p1257_p9, %p1254_p8 }
  0x1c   :  { %1262 = shalt.err (!%p1259_p10)
}
  0x1d   :  { %s1263_s29 = scalar_lea.vmem %s1476_s30, 2048  ;;  %p1268_p12 = scmp.lt.s32.totalorder %s1476_s30, %s1476_s30 }
  0x1e   :  { %p1264_p11 = scmp.ne.s32.totalorder %s1476_s30, %s1263_s29  ;;  %p1269_p13 = scmp.lt.s32.totalorder %s1263_s29, %s1263_s29 }
  0x20   :  { %p1270_p0 = por %p1269_p13, %p1268_p12 }
  0x22   :  { %p1271_p1 = pnand %p1270_p0, %p1264_p11 }
  0x24   :  { %1274 = shalt.err (!%p1271_p1)
}
  0x25   :  { %s1423_s1 = smov 128   ;;  %s1424_s28 = smov 8  }
  0x26   :  { %67 = dma.hbm_to_vmem [thread:$0]  %s1627_s3, 2048, %s1476_s30, [#allocation9], %s1423_s1, %s1423_s1, %s1424_s28  }
  0x27   :  { %s1425_s11 = smov [#allocation2]   ;;  %s1426_s13 = smov [#allocation7]  }
  0x28   :  { %s25_s12 = sshll.u32 %s1425_s11, 4  ;;  %s49_s14 = sshll.u32 %s1426_s13, 4  ;;  %s26_s12 = int_to_ptr.vmem [resolvable:$true] %s25_s12  ;;  %s1513_s14 = int_to_ptr.vmem [resolvable:$true] %s49_s14 }
  0x29   :  { %s1275_s19 = scalar_lea.hbm %s1624_s0, 512 }
  0x2a   :  { %p1276_p2 = scmp.ne.s32.totalorder %s1624_s0, %s1275_s19  ;;  %p1279_p3 = scmp.lt.u32.totalorder %s1275_s19, %s1624_s0 }
  0x2c   :  { %p1281_p4 = pnand %p1279_p3, %p1276_p2 }
  0x2e   :  { %1284 = shalt.err (!%p1281_p4)
}
  0x2f   :  { %s1285_s3 = scalar_lea.vmem %s26_s12, 512  ;;  %p1290_p6 = scmp.lt.s32.totalorder %s26_s12, %s26_s12 }
  0x30   :  { %p1286_p5 = scmp.ne.s32.totalorder %s26_s12, %s1285_s3  ;;  %p1291_p7 = scmp.lt.s32.totalorder %s1285_s3, %s1285_s3 }
  0x32   :  { %p1292_p8 = por %p1291_p7, %p1290_p6 }
  0x34   :  { %p1293_p9 = pnand %p1292_p8, %p1286_p5 }
  0x36   :  { %1296 = shalt.err (!%p1293_p9)
}
  0x37   :  { %31 = dma.hbm_to_vmem [thread:$0]  %s1624_s0, 512, %s26_s12, [#allocation3], %s1421_s17, %s1421_s17, %s1422_s18  }
  0x38   :  { %s1297_s27 = scalar_lea.hbm %s1626_s2, 512 }
  0x39   :  { %p1298_p10 = scmp.ne.s32.totalorder %s1626_s2, %s1297_s27  ;;  %p1301_p11 = scmp.lt.u32.totalorder %s1297_s27, %s1626_s2 }
  0x3b   :  { %p1303_p12 = pnand %p1301_p11, %p1298_p10 }
  0x3d   :  { %1306 = shalt.err (!%p1303_p12)
}
  0x3e   :  { %s1307_s13 = scalar_lea.vmem %s1513_s14, 512  ;;  %p1312_p0 = scmp.lt.s32.totalorder %s1513_s14, %s1513_s14 }
  0x3f   :  { %p1308_p13 = scmp.ne.s32.totalorder %s1513_s14, %s1307_s13  ;;  %p1313_p1 = scmp.lt.s32.totalorder %s1307_s13, %s1307_s13 }
  0x41   :  { %p1314_p2 = por %p1313_p1, %p1312_p0 }
  0x43   :  { %p1315_p3 = pnand %p1314_p2, %p1308_p13 }
  0x45   :  { %1318 = shalt.err (!%p1315_p3)
}
  0x46   :  { %55 = dma.hbm_to_vmem [thread:$0]  %s1626_s2, 512, %s1513_s14, [#allocation6], %s1421_s17, %s1421_s17, %s1422_s18  }
  0x47   :  { %s1427_s15 = smov [#allocation10]   ;;  %s1428_s19 = smov [#allocation11]  }
  0x48   :  { %s73_s16 = sshll.u32 %s1427_s15, 4  ;;  %s87_s20 = sshll.u32 %s1428_s19, 4  ;;  %s74_s16 = int_to_ptr.vmem [resolvable:$true] %s73_s16  ;;  %s1550_s20 = int_to_ptr.vmem [resolvable:$true] %s87_s20 }
  0x49   :  { %s1319_s23 = scalar_lea.hbm %s1628_s4, 2048 }
  0x4a   :  { %p1320_p4 = scmp.ne.s32.totalorder %s1628_s4, %s1319_s23  ;;  %p1323_p5 = scmp.lt.u32.totalorder %s1319_s23, %s1628_s4 }
  0x4c   :  { %p1325_p6 = pnand %p1323_p5, %p1320_p4 }
  0x4e   :  { %1328 = shalt.err (!%p1325_p6)
}
  0x4f   :  { %s1329_s2 = scalar_lea.vmem %s74_s16, 2048  ;;  %p1334_p8 = scmp.lt.s32.totalorder %s74_s16, %s74_s16 }
  0x50   :  { %p1330_p7 = scmp.ne.s32.totalorder %s74_s16, %s1329_s2  ;;  %p1335_p9 = scmp.lt.s32.totalorder %s1329_s2, %s1329_s2 }
  0x52   :  { %p1336_p10 = por %p1335_p9, %p1334_p8 }
  0x54   :  { %p1337_p11 = pnand %p1336_p10, %p1330_p7 }
  0x56   :  { %1340 = shalt.err (!%p1337_p11)
}
  0x57   :  { %79 = dma.hbm_to_vmem [thread:$0]  %s1628_s4, 2048, %s74_s16, [#allocation9], %s1423_s1, %s1423_s1, %s1424_s28  }
  0x58   :  { %s1341_s9 = scalar_lea.hbm %s1630_s6, 2048 }
  0x59   :  { %p1342_p12 = scmp.ne.s32.totalorder %s1630_s6, %s1341_s9  ;;  %p1345_p13 = scmp.lt.u32.totalorder %s1341_s9, %s1630_s6 }
  0x5b   :  { %p1347_p0 = pnand %p1345_p13, %p1342_p12 }
  0x5d   :  { %1350 = shalt.err (!%p1347_p0)
}
  0x5e   :  { %s1351_s12 = scalar_lea.vmem %s1550_s20, 2048  ;;  %p1356_p2 = scmp.lt.s32.totalorder %s1550_s20, %s1550_s20 }
  0x5f   :  { %p1352_p1 = scmp.ne.s32.totalorder %s1550_s20, %s1351_s12  ;;  %p1357_p3 = scmp.lt.s32.totalorder %s1351_s12, %s1351_s12 }
  0x61   :  { %p1358_p4 = por %p1357_p3, %p1356_p2 }
  0x63   :  { %p1359_p5 = pnand %p1358_p4, %p1352_p1 }
  0x65   :  { %1362 = shalt.err (!%p1359_p5)
}
  0x66   :  { %93 = dma.hbm_to_vmem [thread:$0]  %s1630_s6, 2048, %s1550_s20, [#allocation12], %s1423_s1, %s1423_s1, %s1424_s28  }
  0x67   :  { %1407 = dma.done.wait [#allocation3], 512  }
  0x68   :  { %1408 = vsyncadd [#allocation3], 4294966784 }
  0x69   :  { %1409 = dma.done.wait [#allocation6], 1024  }
  0x6a   :  { %1410 = vsyncadd [#allocation6], 4294966272 }
  0x6b   :  { %1411 = dma.done.wait [#allocation9], 4096  }
  0x6c   :  { %1412 = vsyncadd [#allocation9], 4294963200 }
  0x6d   :  { %1413 = dma.done.wait [#allocation12], 2048  }
  0x6e   :  { %1414 = vsyncadd [#allocation12], 4294965248  ;;  %v1223_v0 = vld [vmem:[#allocation5] sm:$0xff]   ;;  %v1224_v1 = vld [vmem:[#allocation5 + $0x8] sm:$0xff]   ;;  %vm173_vm0 = vcmask 523264  }
  0x6f   :  { %959 = vmatprep.subr.bf16.mxu0 %v1223_v0  ;;  %v1225_v2 = vld [vmem:[#allocation5 + $0x10] sm:$0xff]   ;;  %v1227_v3 = vld [vmem:[#allocation2] sm:$0xff]   ;;  %v1226_v4 = vld [vmem:[#allocation5 + $0x18] sm:$0xff]  }
  0x70   :  { %960 = vmatpush3.bf16.msra.mxu0 %v1223_v0  ;;  %967 = vmatprep.mubr.msk.bf16.mxu0 %vm173_vm0, %v1227_v3  ;;  %v283_v5 = vld [vmem:[#allocation10] sm:$0xff]  ;;  %v284_v6 = vld [vmem:[#allocation10 + $0x8] sm:$0xff]  ;;  %v285_v7 = vld [vmem:[#allocation10 + $0x10] sm:$0xff] }
  0x71   :  { %961 = vmatprep.subr.bf16.mxu0 %v1224_v1  ;;  %v1107_v8 = vpack.c.bf16 %v284_v6, %v283_v5  ;;  %v286_v9 = vld [vmem:[#allocation10 + $0x18] sm:$0xff]  ;;  %v287_v11 = vld [vmem:[#allocation10 + $0x20] sm:$0xff]  ;;  %v288_v12 = vld [vmem:[#allocation10 + $0x28] sm:$0xff] }
  0x72   :  { %v1111_v10 = vpack.c.bf16 %v286_v9, %v285_v7  ;;  %v1115_v13 = vpack.c.bf16 %v288_v12, %v287_v11  ;;  %v815_v14 = vld [vmem:[#allocation7] sm:$0xff]   ;;  %v1228_v15 = vld [vmem:[#allocation2 + $0x8] sm:$0xff]   ;;  %v289_v16 = vld [vmem:[#allocation10 + $0x30] sm:$0xff] }
  0x73   :  { %1108 = vmatprep.subr.bf16.mxu1 %v1107_v8  ;;  %v290_v17 = vld [vmem:[#allocation10 + $0x38] sm:$0xff]  ;;  %v816_v18 = vunpack.c.l.bf16 %v815_v14  ;;  %v1229_v19 = vld [vmem:[#allocation2 + $0x10] sm:$0xff]   ;;  %v291_v21 = vld [vmem:[#allocation10 + $0x40] sm:$0xff]  ;;  %v817_v40 = vunpack.c.h.bf16 %v815_v14 }
  0x74   :  { %962 = vmatpush3.bf16.msra.mxu0 %v1224_v1  ;;  %1110 = vmatpush3.bf16.msra.mxu1 %v1107_v8  ;;  %v1119_v20 = vpack.c.bf16 %v290_v17, %v289_v16  ;;  %v292_v22 = vld [vmem:[#allocation10 + $0x48] sm:$0xff]  ;;  %v1230_v24 = vld [vmem:[#allocation2 + $0x18] sm:$0xff]   ;;  %v293_v25 = vld [vmem:[#allocation10 + $0x50] sm:$0xff] }
  0x75   :  { %963 = vmatprep.subr.bf16.mxu0 %v1225_v2  ;;  %1112 = vmatprep.subr.bf16.mxu1 %v1111_v10  ;;  %v1123_v23 = vpack.c.bf16 %v292_v22, %v291_v21  ;;  %v294_v26 = vld [vmem:[#allocation10 + $0x58] sm:$0xff]  ;;  %v295_v28 = vld [vmem:[#allocation10 + $0x60] sm:$0xff]  ;;  %v296_v29 = vld [vmem:[#allocation10 + $0x68] sm:$0xff] }
  0x76   :  { %1007 = vmatprep.mubr.f32.mxu1 %v816_v18  ;;  %v1127_v27 = vpack.c.bf16 %v294_v26, %v293_v25  ;;  %v1131_v30 = vpack.c.bf16 %v296_v29, %v295_v28  ;;  %v297_v31 = vld [vmem:[#allocation10 + $0x70] sm:$0xff]  ;;  %v298_v32 = vld [vmem:[#allocation10 + $0x78] sm:$0xff]  ;;  %v267_v34 = vld [vmem:[#allocation8] sm:$0xff] }
  0x77   :  { %v1135_v33 = vpack.c.bf16 %v298_v32, %v297_v31  ;;  %v268_v35 = vld [vmem:[#allocation8 + $0x8] sm:$0xff]  ;;  %v269_v38 = vld [vmem:[#allocation8 + $0x10] sm:$0xff]  ;;  %v270_v39 = vld [vmem:[#allocation8 + $0x18] sm:$0xff] }
  0x78   :  { %964 = vmatpush3.bf16.msra.mxu0 %v1225_v2  ;;  %1114 = vmatpush3.bf16.msra.mxu1 %v1111_v10  ;;  %v1139_v36 = vpack.c.bf16 %v268_v35, %v267_v34  ;;  %v870_v37 = vld [vmem:[#allocation7 + $0x8] sm:$0xff]   ;;  %v1143_v42 = vpack.c.bf16 %v270_v39, %v269_v38  ;;  %v871_v43 = vld [vmem:[#allocation7 + $0x10] sm:$0xff]   ;;  %v271_v44 = vld [vmem:[#allocation8 + $0x20] sm:$0xff] }
  0x79   :  { %965 = vmatprep.subr.bf16.mxu0 %v1226_v4  ;;  %1116 = vmatprep.subr.bf16.mxu1 %v1115_v13  ;;  %v820_v41 = vunpack.c.l.bf16 %v870_v37  ;;  %v272_v45 = vld [vmem:[#allocation8 + $0x28] sm:$0xff]  ;;  %v821_v46 = vunpack.c.h.bf16 %v870_v37  ;;  %v824_v47 = vunpack.c.l.bf16 %v871_v43  ;;  %v872_v49 = vld [vmem:[#allocation7 + $0x18] sm:$0xff]   ;;  %v273_v50 = vld [vmem:[#allocation8 + $0x30] sm:$0xff]  ;;  %v825_v52 = vunpack.c.h.bf16 %v871_v43 }
  0x7a   :  { %v1147_v48 = vpack.c.bf16 %v272_v45, %v271_v44  ;;  %v274_v51 = vld [vmem:[#allocation8 + $0x38] sm:$0xff]  ;;  %v828_v53 = vunpack.c.l.bf16 %v872_v49  ;;  %v275_v55 = vld [vmem:[#allocation8 + $0x40] sm:$0xff]  ;;  %v276_v56 = vld [vmem:[#allocation8 + $0x48] sm:$0xff]  ;;  %v829_v2 = vunpack.c.h.bf16 %v872_v49 }
  0x7b   :  { %v1151_v54 = vpack.c.bf16 %v274_v51, %v273_v50  ;;  %v1155_v57 = vpack.c.bf16 %v276_v56, %v275_v55  ;;  %v277_v58 = vld [vmem:[#allocation8 + $0x50] sm:$0xff]  ;;  %v278_v59 = vld [vmem:[#allocation8 + $0x58] sm:$0xff]  ;;  %v279_v61 = vld [vmem:[#allocation8 + $0x60] sm:$0xff] }
  0x7c   :  { %966 = vmatpush3.bf16.msra.mxu0 %v1226_v4  ;;  %1118 = vmatpush3.bf16.msra.mxu1 %v1115_v13  ;;  %v1159_v60 = vpack.c.bf16 %v278_v59, %v277_v58  ;;  %v280_v62 = vld [vmem:[#allocation8 + $0x68] sm:$0xff]  ;;  %v281_v0 = vld [vmem:[#allocation8 + $0x70] sm:$0xff]  ;;  %v282_v1 = vld [vmem:[#allocation8 + $0x78] sm:$0xff] }
  0x7d   :  { %1120 = vmatprep.subr.bf16.mxu1 %v1119_v20  ;;  %v1163_v63 = vpack.c.bf16 %v280_v62, %v279_v61  ;;  %v1167_v3 = vpack.c.bf16 %v282_v1, %v281_v0  ;;  %v572_v4 = vld [vmem:[#allocation11] sm:$0xff]  ;;  %v573_v5 = vld [vmem:[#allocation11 + $0x8] sm:$0xff]  ;;  %v574_v6 = vld [vmem:[#allocation11 + $0x10] sm:$0xff] }
  0x7e   :  { %v1171_v7 = vpack.c.bf16 %v573_v5, %v572_v4  ;;  %v575_v8 = vld [vmem:[#allocation11 + $0x18] sm:$0xff]  ;;  %v576_v10 = vld [vmem:[#allocation11 + $0x20] sm:$0xff]  ;;  %v577_v11 = vld [vmem:[#allocation11 + $0x28] sm:$0xff] }
  0x7f   :  { %968 = vmatmul.mubr.msk.bf16.vlgmr.msra.gmra.mrb[0].mxu0 %vm173_vm0, %v1228_v15  ;;  %v1175_v9 = vpack.c.bf16 %v575_v8, %v574_v6  ;;  %v1179_v12 = vpack.c.bf16 %v577_v11, %v576_v10  ;;  %v578_v13 = vld [vmem:[#allocation11 + $0x30] sm:$0xff]  ;;  %v579_v14 = vld [vmem:[#allocation11 + $0x38] sm:$0xff]  ;;  %v580_v16 = vld [vmem:[#allocation11 + $0x40] sm:$0xff] }
  0x80   :  { %971 = vmatprep.mubr.msk.bf16.mxu0 %vm173_vm0, %v1229_v19  ;;  %1122 = vmatpush3.bf16.msra.mxu1 %v1119_v20  ;;  %v1183_v15 = vpack.c.bf16 %v579_v14, %v578_v13  ;;  %v581_v17 = vld [vmem:[#allocation11 + $0x48] sm:$0xff]  ;;  %v582_v19 = vld [vmem:[#allocation11 + $0x50] sm:$0xff]  ;;  %v583_v20 = vld [vmem:[#allocation11 + $0x58] sm:$0xff] }
  0x81   :  { %1124 = vmatprep.subr.bf16.mxu1 %v1123_v23  ;;  %1172 = vmatprep.subr.bf16.mxu0 %v1171_v7  ;;  %v1187_v18 = vpack.c.bf16 %v581_v17, %v580_v16  ;;  %v1191_v21 = vpack.c.bf16 %v583_v20, %v582_v19  ;;  %v584_v22 = vld [vmem:[#allocation11 + $0x60] sm:$0xff]  ;;  %v587_v34 = vld [vmem:[#allocation11 + $0x78] sm:$0xff] }
  0x82   :  { %1174 = vmatpush3.bf16.msra.mxu0 %v1171_v7 }
  0x83   :  { %1176 = vmatprep.subr.bf16.mxu0 %v1175_v9 }
  0x84   :  { %1126 = vmatpush3.bf16.msra.mxu1 %v1123_v23  ;;  %v585_v23 = vld [vmem:[#allocation11 + $0x68] sm:$0xff] }
  0x85   :  { %1128 = vmatprep.subr.bf16.mxu1 %v1127_v27 }
  0x86   :  { %1178 = vmatpush3.bf16.msra.mxu0 %v1175_v9 }
  0x87   :  { %972 = vmatmul.mubr.msk.bf16.gmra.mrb[4].mxu0 %vm173_vm0, %v1230_v24  ;;  %1180 = vmatprep.subr.bf16.mxu0 %v1179_v12  ;;  %v1195_v24 = vpack.c.bf16 %v585_v23, %v584_v22 }
  0x88   :  { %1130 = vmatpush3.bf16.msra.mxu1 %v1127_v27 }
  0x89   :  { %1132 = vmatprep.subr.bf16.mxu1 %v1131_v30 }
  0x8a   :  { %1182 = vmatpush3.bf16.msra.mxu0 %v1179_v12 }
  0x8b   :  { %1184 = vmatprep.subr.bf16.mxu0 %v1183_v15 }
  0x8c   :  { %1134 = vmatpush3.bf16.msra.mxu1 %v1131_v30 }
  0x8d   :  { %1136 = vmatprep.subr.bf16.mxu1 %v1135_v33 }
  0x8e   :  { %1186 = vmatpush3.bf16.msra.mxu0 %v1183_v15 }
  0x8f   :  { %1188 = vmatprep.subr.bf16.mxu0 %v1187_v18 }
  0x90   :  { %1138 = vmatpush3.bf16.msra.mxu1 %v1135_v33  ;;  %v586_v33 = vld [vmem:[#allocation11 + $0x70] sm:$0xff] }
  0x91   :  { %1140 = vmatprep.subr.bf16.mxu1 %v1139_v36  ;;  %v1199_v35 = vpack.c.bf16 %v587_v34, %v586_v33 }
  0x92   :  { %1190 = vmatpush3.bf16.msra.mxu0 %v1187_v18 }
  0x93   :  { %1008 = vmatmul.mubr.f32.vlgmr.msra.gmra.mrb[0].mxu1 %v817_v40  ;;  %1192 = vmatprep.subr.bf16.mxu0 %v1191_v21 }
  0x94   :  { %1142 = vmatpush3.bf16.msra.mxu1 %v1139_v36  ;;  %1010 = vmatprep.mubr.f32.mxu1 %v820_v41  ;;  %v781_v36 = vld [vmem:[%s1629_s5] ss:$0 sm:$0xff]  ;;  %s1429_s5 = smov [#allocation13]  }
  0x95   :  { %1144 = vmatprep.subr.bf16.mxu1 %v1143_v42  ;;  %s738_s28 = sshll.u32 %s1429_s5, 4  ;;  %s739_s28 = int_to_ptr.vmem [resolvable:$true] %s738_s28 }
  0x96   :  { %1194 = vmatpush3.bf16.msra.mxu0 %v1191_v21  ;;  %s1363_s16 = scalar_lea.vmem %s739_s28, 512  ;;  %p1368_p7 = scmp.lt.s32.totalorder %s739_s28, %s739_s28 }
  0x97   :  { %1011 = vmatmul.mubr.f32.gmra.mrb[2].mxu1 %v821_v46  ;;  %1196 = vmatprep.subr.bf16.mxu0 %v1195_v24  ;;  %p1364_p6 = scmp.ne.s32.totalorder %s739_s28, %s1363_s16  ;;  %p1369_p8 = scmp.lt.s32.totalorder %s1363_s16, %s1363_s16 }
  0x98   :  { %1146 = vmatpush3.bf16.msra.mxu1 %v1143_v42  ;;  %1013 = vmatprep.mubr.f32.mxu1 %v824_v47 }
  0x99   :  { %1148 = vmatprep.subr.bf16.mxu1 %v1147_v48  ;;  %p1370_p9 = por %p1369_p8, %p1368_p7 }
  0x9a   :  { %1198 = vmatpush3.bf16.msra.mxu0 %v1195_v24 }
  0x9b   :  { %1014 = vmatmul.mubr.f32.gmra.mrb[4].mxu1 %v825_v52  ;;  %1200 = vmatprep.subr.bf16.mxu0 %v1199_v35  ;;  %p1371_p10 = pnand %p1370_p9, %p1364_p6 }
  0x9c   :  { %1150 = vmatpush3.bf16.msra.mxu1 %v1147_v48  ;;  %1016 = vmatprep.mubr.f32.mxu1 %v828_v53 }
  0x9d   :  { %1152 = vmatprep.subr.bf16.mxu1 %v1151_v54 }
  0x9e   :  { %1202 = vmatpush3.bf16.msra.mxu0 %v1199_v35 }
  0x9f   :  { %1017 = vmatmul.mubr.f32.gmra.mrb[6].mxu1 %v829_v2 }
  0xa0   :  { %1154 = vmatpush3.bf16.msra.mxu1 %v1151_v54 }
  0xa1   :  { %1156 = vmatprep.subr.bf16.mxu1 %v1155_v57 }
  0xa4   :  { %1158 = vmatpush3.bf16.msra.mxu1 %v1155_v57 }
  0xa5   :  { %1160 = vmatprep.subr.bf16.mxu1 %v1159_v60 }
  0xa8   :  { %1162 = vmatpush3.bf16.msra.mxu1 %v1159_v60 }
  0xa9   :  { %1164 = vmatprep.subr.bf16.mxu1 %v1163_v63 }
  0xac   :  { %1166 = vmatpush3.bf16.msra.mxu1 %v1163_v63 }
  0xad   :  { %1168 = vmatprep.subr.bf16.mxu1 %v1167_v3 }
  0xb0   :  { %1170 = vmatpush3.bf16.msra.mxu1 %v1167_v3 }
 0x152   :  { %v969_v25 = vpop.f32.mrb[0].mxu0 }
 0x153   :  { %v220_v26 = vpop.f32.mrb[1].mxu0 }
 0x154   :  { %v970_v27 = vpop.f32.mrb[2].mxu0  ;;  %1051 = vmatprep.mubr.f32.mxu1 %v220_v26 }
 0x155   :  { %v223_v28 = vpop.f32.mrb[3].mxu0 }
 0x156   :  { %1052 = vmatmul.mubr.f32.vlgmr.msra.gmra.mrb[0].mxu1 %v223_v28 }
 0x157   :  { %1054 = vmatprep.mubr.f32.mxu1 %v969_v25 }
 0x15a   :  { %v973_v29 = vpop.f32.mrb[4].mxu0  ;;  %1055 = vmatmul.mubr.f32.gmra.mrb[2].mxu1 %v970_v27 }
 0x15b   :  { %v236_v30 = vpop.f32.mrb[5].mxu0 }
 0x15c   :  { %v974_v31 = vpop.f32.mrb[6].mxu0  ;;  %1057 = vmatprep.mubr.f32.mxu1 %v236_v30 }
 0x15d   :  { %v239_v32 = vpop.f32.mrb[7].mxu0 }
 0x15e   :  { %1058 = vmatmul.mubr.f32.gmra.mrb[4].mxu1 %v239_v32 }
 0x15f   :  { %1060 = vmatprep.mubr.f32.mxu1 %v973_v29 }
 0x162   :  { %1061 = vmatmul.mubr.f32.gmra.mrb[6].mxu1 %v974_v31 }
 0x229   :  { %v1053_v37 = vpop.f32.mrb[0].mxu1 }
 0x22a   :  { %v517_v38 = vadd.f32 %v1053_v37, %v781_v36  ;;  %v470_v39 = vpop.f32.mrb[1].mxu1 }
 0x22b   :  { %v516_v40 = vadd.f32 %v781_v36, %v470_v39 }
 0x22c   :  { %v525_v41 = vmax.f32 %v517_v38, 0.0 }
 0x22d   :  { %v524_v42 = vmax.f32 %v516_v40, 0.0  ;;  %v1056_v43 = vpop.f32.mrb[2].mxu1 }
 0x22e   :  { %v519_v44 = vadd.f32 %v1056_v43, %v781_v36  ;;  %v480_v45 = vpop.f32.mrb[3].mxu1 }
 0x22f   :  { %v833_v46 = vpack.c.bf16 %v525_v41, %v524_v42  ;;  %v518_v47 = vadd.f32 %v781_v36, %v480_v45  ;;  %1095 = vmatprep.mubr.f32.mxu0 %v524_v42 }
 0x230   :  { %v527_v48 = vmax.f32 %v519_v44, 0.0  ;;  %1096 = vmatmul.mubr.f32.vlgmr.msra.gmra.mrb[8].mxu0 %v525_v41 }
 0x231   :  { %834 = vst [vmem:[#allocation13] sm:$0xff] %v833_v46   ;;  %v526_v49 = vmax.f32 %v518_v47, 0.0  ;;  %v1059_v50 = vpop.f32.mrb[4].mxu1 }
 0x232   :  { %v521_v51 = vadd.f32 %v1059_v50, %v781_v36  ;;  %v490_v52 = vpop.f32.mrb[5].mxu1 }
 0x233   :  { %v838_v53 = vpack.c.bf16 %v527_v48, %v526_v49  ;;  %v520_v54 = vadd.f32 %v781_v36, %v490_v52  ;;  %1098 = vmatprep.mubr.f32.mxu0 %v526_v49 }
 0x234   :  { %v529_v55 = vmax.f32 %v521_v51, 0.0  ;;  %1099 = vmatmul.mubr.f32.gmra.mrb[10].mxu0 %v527_v48 }
 0x235   :  { %873 = vst [vmem:[#allocation13 + $0x8] sm:$0xff] %v838_v53   ;;  %v528_v56 = vmax.f32 %v520_v54, 0.0  ;;  %v1062_v57 = vpop.f32.mrb[6].mxu1 }
 0x236   :  { %v523_v58 = vadd.f32 %v1062_v57, %v781_v36  ;;  %v500_v59 = vpop.f32.mrb[7].mxu1 }
 0x237   :  { %v843_v60 = vpack.c.bf16 %v529_v55, %v528_v56  ;;  %v522_v61 = vadd.f32 %v781_v36, %v500_v59  ;;  %1101 = vmatprep.mubr.f32.mxu0 %v528_v56 }
 0x238   :  { %v531_v62 = vmax.f32 %v523_v58, 0.0  ;;  %1102 = vmatmul.mubr.f32.gmra.mrb[12].mxu0 %v529_v55 }
 0x239   :  { %874 = vst [vmem:[#allocation13 + $0x10] sm:$0xff] %v843_v60   ;;  %v530_v63 = vmax.f32 %v522_v61, 0.0 }
 0x23b   :  { %v848_v0 = vpack.c.bf16 %v531_v62, %v530_v63  ;;  %1104 = vmatprep.mubr.f32.mxu0 %v530_v63 }
 0x23c   :  { %1105 = vmatmul.mubr.f32.gmra.mrb[14].mxu0 %v531_v62 }
 0x23d   :  { %875 = vst [vmem:[#allocation13 + $0x18] sm:$0xff] %v848_v0  }
 0x23e   :  { %1374 = shalt.err (!%p1371_p10)
}
 0x23f   :  { %s1375_s21 = scalar_lea.hbm %s1631_s7, 512 }
 0x240   :  { %p1376_p11 = scmp.ne.s32.totalorder %s1631_s7, %s1375_s21  ;;  %p1379_p12 = scmp.lt.u32.totalorder %s1375_s21, %s1631_s7 }
 0x242   :  { %p1381_p13 = pnand %p1379_p12, %p1376_p11 }
 0x244   :  { %1384 = shalt.err (!%p1381_p13)
}
 0x245   :  { %744 = dma.vmem_to_hbm [thread:$0]  %s739_s28, 512, %s1631_s7, [#allocation4], %s1421_s17, %s1421_s17, %s1422_s18  }
 0x246   :  { %s1430_s2 = smov [#allocation14]  }
 0x247   :  { %s750_s14 = sshll.u32 %s1430_s2, 4  ;;  %s751_s14 = int_to_ptr.vmem [resolvable:$true] %s750_s14 }
 0x248   :  { %s1385_s7 = scalar_lea.vmem %s751_s14, 512  ;;  %p1390_p1 = scmp.lt.s32.totalorder %s751_s14, %s751_s14 }
 0x249   :  { %p1386_p0 = scmp.ne.s32.totalorder %s751_s14, %s1385_s7  ;;  %p1391_p2 = scmp.lt.s32.totalorder %s1385_s7, %s1385_s7 }
 0x24b   :  { %p1392_p3 = por %p1391_p2, %p1390_p1 }
 0x24d   :  { %p1393_p4 = pnand %p1392_p3, %p1386_p0 }
 0x303   :  { %v1097_v1 = vpop.f32.mrb[8].mxu0 }
 0x304   :  { %v654_v2 = vpop.f32.mrb[9].mxu0 }
 0x305   :  { %v853_v3 = vpack.c.bf16 %v1097_v1, %v654_v2 }
 0x307   :  { %854 = vst [vmem:[#allocation14] sm:$0xff] %v853_v3   ;;  %v1100_v4 = vpop.f32.mrb[10].mxu0 }
 0x308   :  { %v664_v5 = vpop.f32.mrb[11].mxu0 }
 0x309   :  { %v858_v6 = vpack.c.bf16 %v1100_v4, %v664_v5 }
 0x30b   :  { %876 = vst [vmem:[#allocation14 + $0x8] sm:$0xff] %v858_v6   ;;  %v1103_v7 = vpop.f32.mrb[12].mxu0 }
 0x30c   :  { %v674_v8 = vpop.f32.mrb[13].mxu0 }
 0x30d   :  { %v863_v9 = vpack.c.bf16 %v1103_v7, %v674_v8 }
 0x30f   :  { %877 = vst [vmem:[#allocation14 + $0x10] sm:$0xff] %v863_v9   ;;  %v1106_v10 = vpop.f32.mrb[14].mxu0 }
 0x310   :  { %v684_v11 = vpop.f32.mrb[15].mxu0 }
 0x311   :  { %v868_v12 = vpack.c.bf16 %v1106_v10, %v684_v11 }
 0x313   :  { %878 = vst [vmem:[#allocation14 + $0x18] sm:$0xff] %v868_v12  }
 0x314   :  { %1396 = shalt.err (!%p1393_p4)
}
 0x315   :  { %s1397_s29 = scalar_lea.hbm %s1632_s8, 512 }
 0x316   :  { %p1398_p5 = scmp.ne.s32.totalorder %s1632_s8, %s1397_s29  ;;  %p1401_p6 = scmp.lt.u32.totalorder %s1397_s29, %s1632_s8 }
 0x318   :  { %p1403_p7 = pnand %p1401_p6, %p1398_p5 }
 0x31a   :  { %1406 = shalt.err (!%p1403_p7)
}
 0x31b   :  { %756 = dma.vmem_to_hbm [thread:$0]  %s751_s14, 512, %s1632_s8, [#allocation15], %s1421_s17, %s1421_s17, %s1422_s18  }
 0x31c   :  { %1415 = dma.done.wait [#allocation4], 512  }
 0x31d   :  { %1416 = vsyncadd [#allocation4], 4294966784 }
 0x31e   :  { %1417 = dma.done.wait [#allocation15], 512  }
 0x31f   :  { %1418 = vsyncadd [#allocation15], 4294966784 }
 0x320   :  { %763 = vsyncpa [#allocation3], 1 }
 0x321   :  { %764 = vsyncpa [#allocation6], 1 }
 0x322   :  { %765 = vsyncpa [#allocation9], 1 }
 0x323   :  { %766 = vsyncpa [#allocation12], 1 }
 0x324   :  { %767 = vsyncpa [#allocation4], 1 }
 0x325   :  { %768 = vsyncpa [#allocation15], 1 }

</bundles_post_ra>
